<compile_context>
chip_gen: v7x
topology: tpu7x:2x2x1
jax: 0.10.0
libtpu: 0.0.40
codegen_flags: <defaults>
</compile_context>

<pallas_src>
import functools

import jax
import jax.numpy as jnp
from jax.experimental import pallas as pl
from jax.experimental.pallas import tpu as pltpu

LN_EPS = 1e-5          # torch.nn.LayerNorm default
_TARGET_ROWS = 512     # rows (voxels) per grid step target


def _vmem_limit_and_budget():
    """Generation-aware VMEM scoped limit and tile-sizing budget (bytes)."""
    try:
        cap = getattr(pltpu.get_tpu_info(), "vmem_capacity_bytes", None)
    except Exception:  # pragma: no cover - info query not available
        cap = None
    if not cap:
        cap = 64 * 1024 * 1024          # conservative fallback (v7x per-core VMEM)
    limit = min(int(cap) // 2, 64 * 1024 * 1024)   # 64 MiB v5e/v6e, 32 MiB v7x
    budget = (limit * 3) // 4                       # 48 MiB v5e/v6e, 24 MiB v7x
    return int(limit), int(budget)


def _largest_divisor_leq(n, cap):
    cap = max(1, min(int(cap), int(n)))
    for v in range(cap, 0, -1):
        if n % v == 0:
            return v
    return 1


def _choose_ht(h, w, c, dim, in_b, out_b, mxu_b, n_bd, budget):
    """Spatial lines (h values) per grid step."""
    if w % 8 != 0:
        # Keep the in-kernel (ht, w, c) <-> (ht*w, c) reshapes relayout-free.
        return 1
    # Resident weight + bias, assume the pipeliner double-buffers the
    # constant-index blocks (review item: account 2x).
    fixed = 2 * (c * 6 * dim * mxu_b) + 2 * (6 * dim * 4)
    per_line = w * (2 * c * in_b                 # input block, double buffered
                    + 2 * 8 * dim * out_b        # output block, double buffered
                    + c * (4 + mxu_b)            # xf (f32) + xn (mxu dtype)
                    + 6 * dim * (4 + out_b)      # y f32 accumulator + cast copy
                    + dim * out_b)               # zero slab
    avail = budget - fixed - (2 << 20)           # 2 MiB slack for compiler scratch
    ht = max(1, min(h, avail // per_line, max(1, _TARGET_ROWS // w)))
    ht = _largest_divisor_leq(h, ht)
    # Give the pipeline / both v7x TensorCores enough steps (>= ~8 total).
    while ht > 1 and n_bd * (h // ht) < 8:
        ht = _largest_divisor_leq(h, ht - 1)
    return ht


def _make_kernel(ht, w, c, dim, mxu_dtype):
    """LayerNorm (affine folded into W/b) + expansion matmul + fused parity scatter."""

    def kernel(x_ref, w_ref, b_ref, o_ref):
        # x_ref: (ht, w, c)            input lines (caller dtype)
        # w_ref: (c, 6*dim)            fused weight, live parity columns only
        # b_ref: (1, 6*dim)            fused bias (f32)
        # o_ref: (2, ht, 2, w, 2*dim)  output slab laid out (pd, h, ph, w, pw*dim)
        xf = x_ref[...].astype(jnp.float32).reshape(ht * w, c)
        mean = jnp.mean(xf, axis=-1, keepdims=True)
        ex2 = jnp.mean(xf * xf, axis=-1, keepdims=True)
        var = jnp.maximum(ex2 - mean * mean, 0.0)     # single pass, biased (torch)
        xn = ((xf - mean) * jax.lax.rsqrt(var + LN_EPS)).astype(mxu_dtype)
        y = jnp.dot(xn, w_ref[...], preferred_element_type=jnp.float32)
        y = (y + b_ref[...]).astype(o_ref.dtype).reshape(ht, w, 6 * dim)
        zeros = jnp.zeros((ht, w, dim), o_ref.dtype)
        # Live chunk layout along y's lane dim (parity (pd, ph, pw) -> torch chunk):
        #   [0:2d]  = (0,0,0)->0 | (0,0,1)->6
        #   [2d:3d] = (0,1,0)->5            ((0,1,1) stays zero)
        #   [3d:5d] = (1,0,0)->1 | (1,0,1)->4
        #   [5d:6d] = (1,1,1)->7            ((1,1,0) stays zero)
        o_ref[0, :, 0, :, :] = y[:, :, 0:2 * dim]
        o_ref[0, :, 1, :, 0:dim] = y[:, :, 2 * dim:3 * dim]
        o_ref[0, :, 1, :, dim:2 * dim] = zeros
        o_ref[1, :, 0, :, :] = y[:, :, 3 * dim:5 * dim]
        o_ref[1, :, 1, :, 0:dim] = zeros
        o_ref[1, :, 1, :, dim:2 * dim] = y[:, :, 5 * dim:6 * dim]

    return kernel


@functools.partial(jax.jit, static_argnames=("dim", "use_bf16_mxu"))
def patch_expanding_forward(x, gamma, beta, weight, *, dim, use_bf16_mxu=True):
    """Reproduces PatchExpanding.forward (channels-last).

    x:      (B, D, H, W, C) with C == 2*dim   (bf16 or f32; output dtype matches)
    gamma:  (2*dim,)        LayerNorm weight
    beta:   (2*dim,)        LayerNorm bias
    weight: (8*dim, 2*dim)  nn.Linear weight (torch layout; y = x @ weight.T)
    returns (B, 2D, 2H, 2W, dim) in x.dtype
    """
    b, d, h, w, c = x.shape
    assert c == 2 * dim, "input channel count must equal 2*dim"
    out_dtype = x.dtype
    mxu_dtype = (jnp.bfloat16
                 if (use_bf16_mxu or out_dtype == jnp.bfloat16) else jnp.float32)

    # Fold LayerNorm affine into the matmul (done once, in f32):
    #   (xn*gamma + beta) @ W.T == xn @ (diag(gamma) @ W.T) + beta @ W.T
    w_t = gamma.astype(jnp.float32)[:, None] * weight.T.astype(jnp.float32)  # (C, 8*dim)
    b_t = beta.astype(jnp.float32) @ weight.T.astype(jnp.float32)            # (8*dim,)

    # Keep only the 6 live output chunks, in parity-major (pd, ph, pw) order.
    # Final chunk per parity (reproducing the module's exact overwrite semantics):
    #   (0,0,0)->0 (0,0,1)->6 (0,1,0)->5 (0,1,1)->zero
    #   (1,0,0)->1 (1,0,1)->4 (1,1,0)->zero (1,1,1)->7
    live_chunks = (0, 6, 5, 1, 4, 7)
    w_live = jnp.concatenate(
        [w_t[:, s * dim:(s + 1) * dim] for s in live_chunks], axis=1)  # (C, 6*dim)
    b_live = jnp.concatenate(
        [b_t[s * dim:(s + 1) * dim] for s in live_chunks], axis=0)     # (6*dim,)

    n_bd = b * d
    x4 = x.reshape(n_bd, h, w, c)   # free merge of adjacent leading dims

    in_b = jnp.dtype(out_dtype).itemsize
    out_b = in_b
    mxu_b = jnp.dtype(mxu_dtype).itemsize
    vmem_limit, budget = _vmem_limit_and_budget()
    ht = _choose_ht(h, w, c, dim, in_b, out_b, mxu_b, n_bd, budget)
    grid = (n_bd, h // ht)

    out6 = pl.pallas_call(
        _make_kernel(ht, w, c, dim, mxu_dtype),
        out_shape=jax.ShapeDtypeStruct((n_bd, 2, h, 2, w, 2 * dim), out_dtype),
        grid=grid,
        in_specs=[
            pl.BlockSpec((None, ht, w, c), lambda i, j: (i, j, 0, 0)),
            pl.BlockSpec((c, 6 * dim), lambda i, j: (0, 0)),
            pl.BlockSpec((1, 6 * dim), lambda i, j: (0, 0)),
        ],
        out_specs=pl.BlockSpec((None, 2, ht, 2, w, 2 * dim),
                               lambda i, j: (i, 0, j, 0, 0, 0)),
        compiler_params=pltpu.CompilerParams(
            dimension_semantics=("parallel", "parallel"),
            vmem_limit_bytes=vmem_limit,
        ),
    )(x4, w_live.astype(mxu_dtype), b_live.reshape(1, 6 * dim).astype(jnp.float32))

    # (b*d, pd, h, ph, w, pw*dim) -> (b, 2d, 2h, 2w, dim) is memory-order
    # preserving: a free reshape, no transpose / extra HBM round trip.
    return out6.reshape(b, 2 * d, 2 * h, 2 * w, dim)


def _reference(x, gamma, beta, weight, dim):
    """Pure-JAX f32 reference replicating the original assignment order exactly."""
    xf = x.astype(jnp.float32)
    gf = gamma.astype(jnp.float32)
    bf = beta.astype(jnp.float32)
    wf = weight.astype(jnp.float32)
    mean = jnp.mean(xf, axis=-1, keepdims=True)
    var = jnp.mean((xf - mean) ** 2, axis=-1, keepdims=True)
    xn = (xf - mean) / jnp.sqrt(var + LN_EPS) * gf + bf
    x_ = jnp.einsum("bdhwc,oc->bdhwo", xn, wf)
    b, d, h, w, c = x.shape
    out = jnp.zeros((b, 2 * d, 2 * h, 2 * w, c // 2), dtype=jnp.float32)
    dm = dim
    out = out.at[:, 0::2, 0::2, 0::2, :].set(x_[..., 0 * dm:1 * dm])
    out = out.at[:, 1::2, 0::2, 0::2, :].set(x_[..., 1 * dm:2 * dm])
    out = out.at[:, 0::2, 1::2, 0::2, :].set(x_[..., 2 * dm:3 * dm])
    out = out.at[:, 0::2, 0::2, 1::2, :].set(x_[..., 3 * dm:4 * dm])
    out = out.at[:, 1::2, 0::2, 1::2, :].set(x_[..., 4 * dm:5 * dm])
    out = out.at[:, 0::2, 1::2, 0::2, :].set(x_[..., 5 * dm:6 * dm])  # overwrites chunk 2
    out = out.at[:, 0::2, 0::2, 1::2, :].set(x_[..., 6 * dm:7 * dm])  # overwrites chunk 3
    out = out.at[:, 1::2, 1::2, 1::2, :].set(x_[..., 7 * dm:8 * dm])
    return out


if __name__ == "__main__":
    # Module config: dim=4 -> input channels C = 2*dim = 8,
    # expansion Linear: (2*dim=8) -> (8*dim=32), LayerNorm over 8 channels.
    dim = 4
    c = 2 * dim
    configs = [
        (2, 4, 8, 8),   # W % 8 == 0 -> multi-line (ht>1) tiles
        (1, 3, 5, 6),   # W % 8 != 0, odd H -> one-line tiles, many grid steps
    ]
    key = jax.random.PRNGKey(0)
    for idx, (b, d, h, w) in enumerate(configs):
        kx, kw, kg, kb = jax.random.split(jax.random.fold_in(key, idx), 4)
        x = jax.random.normal(kx, (b, d, h, w, c), dtype=jnp.float32)
        weight = jax.random.normal(kw, (8 * dim, 2 * dim), dtype=jnp.float32) * 0.1
        gamma = 1.0 + 0.01 * jax.random.normal(kg, (c,), dtype=jnp.float32)
        beta = 0.01 * jax.random.normal(kb, (c,), dtype=jnp.float32)

        ref = _reference(x, gamma, beta, weight, dim)

        # Default fast path: bf16 MXU inputs, f32 LN stats / accumulation.
        out = jax.block_until_ready(
            patch_expanding_forward(x, gamma, beta, weight, dim=dim))
        assert out.shape == (b, 2 * d, 2 * h, 2 * w, dim)
        assert out.dtype == x.dtype
        assert jnp.allclose(out, ref, atol=2e-2, rtol=2e-2), \
            f"bf16-MXU path mismatch (cfg {idx})"

        if idx == 0:
            # Exact f32 MXU path.
            out_exact = jax.block_until_ready(
                patch_expanding_forward(x, gamma, beta, weight, dim=dim,
                                        use_bf16_mxu=False))
            assert jnp.allclose(out_exact, ref, atol=1e-4, rtol=1e-4), \
                "f32 MXU path mismatch"

            # bf16 streaming path (halved HBM traffic, f32 stats/accumulation).
            xb = x.astype(jnp.bfloat16)
            wb = weight.astype(jnp.bfloat16)
            out_b16 = jax.block_until_ready(
                patch_expanding_forward(xb, gamma, beta, wb, dim=dim))
            assert out_b16.dtype == jnp.bfloat16
            ref_b16 = _reference(xb, gamma, beta, wb, dim)
            assert jnp.allclose(out_b16.astype(jnp.float32), ref_b16,
                                atol=3e-2, rtol=3e-2), "bf16 streaming path mismatch"

    print("KERNEL_OK")
</pallas_src>

<mosaic_0001>
module attributes {stable_mosaic.version = 11 : i64} {
  func.func @kernel(%arg0: i32, %arg1: i32, %arg2: memref<1x8x8x8xf32, #tpu.memory_space<vmem>>, %arg3: memref<8x24xbf16, #tpu.memory_space<vmem>>, %arg4: memref<1x24xf32, #tpu.memory_space<vmem>>, %arg5: memref<1x2x8x2x8x8xf32, #tpu.memory_space<vmem>>) attributes {dimension_semantics = [#tpu.dimension_semantics<parallel>, #tpu.dimension_semantics<parallel>], iteration_bounds = array<i64: 8, 1>, scalar_prefetch = 0 : i64, scratch_operands = 0 : i64, tpu.core_type = #tpu.core_type<tc>, window_params = [{transform_indices = @transform_0, window_bounds = array<i64: 1, 8, 8, 8>}, {pipeline_mode = #tpu.pipeline_mode<synchronous>, transform_indices = @transform_1, window_bounds = array<i64: 8, 24>}, {pipeline_mode = #tpu.pipeline_mode<synchronous>, transform_indices = @transform_2, window_bounds = array<i64: 1, 24>}, {transform_indices = @transform_3, window_bounds = array<i64: 1, 2, 8, 2, 8, 8>}]} {
    %c0 = arith.constant 0 : index
    %c0_0 = arith.constant 0 : index
    %c0_1 = arith.constant 0 : index
    %c0_2 = arith.constant 0 : index
    %0 = vector.load %arg2[%c0, %c0_0, %c0_1, %c0_2] : memref<1x8x8x8xf32, #tpu.memory_space<vmem>>, vector<1x8x8x8xf32>
    %1 = vector.shape_cast %0 : vector<1x8x8x8xf32> to vector<8x8x8xf32>
    %2 = vector.shape_cast %1 : vector<8x8x8xf32> to vector<64x8xf32>
    %cst = arith.constant dense<0.000000e+00> : vector<64xf32>
    %3 = vector.multi_reduction <add>, %2, %cst [1] : vector<64x8xf32> to vector<64xf32>
    %4 = vector.shape_cast %3 : vector<64xf32> to vector<64x1xf32>
    %cst_3 = arith.constant 8.000000e+00 : f32
    %5 = vector.broadcast %cst_3 : f32 to vector<64x1xf32>
    %6 = arith.divf %4, %5 : vector<64x1xf32>
    %7 = arith.mulf %2, %2 : vector<64x8xf32>
    %cst_4 = arith.constant dense<0.000000e+00> : vector<64xf32>
    %8 = vector.multi_reduction <add>, %7, %cst_4 [1] : vector<64x8xf32> to vector<64xf32>
    %9 = vector.shape_cast %8 : vector<64xf32> to vector<64x1xf32>
    %cst_5 = arith.constant 8.000000e+00 : f32
    %10 = vector.broadcast %cst_5 : f32 to vector<64x1xf32>
    %11 = arith.divf %9, %10 : vector<64x1xf32>
    %12 = arith.mulf %6, %6 : vector<64x1xf32>
    %13 = arith.subf %11, %12 : vector<64x1xf32>
    %cst_6 = arith.constant 0.000000e+00 : f32
    %14 = vector.broadcast %cst_6 : f32 to vector<64x1xf32>
    %15 = arith.maximumf %13, %14 : vector<64x1xf32>
    %16 = vector.broadcast %6 : vector<64x1xf32> to vector<64x8xf32>
    %17 = arith.subf %2, %16 : vector<64x8xf32>
    %cst_7 = arith.constant 9.99999974E-6 : f32
    %18 = vector.broadcast %cst_7 : f32 to vector<64x1xf32>
    %19 = arith.addf %15, %18 : vector<64x1xf32>
    %20 = math.rsqrt %19 : vector<64x1xf32>
    %21 = vector.broadcast %20 : vector<64x1xf32> to vector<64x8xf32>
    %22 = arith.mulf %17, %21 : vector<64x8xf32>
    %23 = arith.truncf %22 : vector<64x8xf32> to vector<64x8xbf16>
    %c0_8 = arith.constant 0 : index
    %c0_9 = arith.constant 0 : index
    %24 = vector.load %arg3[%c0_8, %c0_9] : memref<8x24xbf16, #tpu.memory_space<vmem>>, vector<8x24xbf16>
    %cst_10 = arith.constant dense<0.000000e+00> : vector<64x24xf32>
    %25 = tpu.matmul %23, %24, %cst_10 {dimension_numbers = #tpu.dot_dimension_numbers<[1], [0], [0], [1], [0, 0, 1, 1], [], []>} : vector<64x8xbf16>, vector<8x24xbf16>, vector<64x24xf32> -> vector<64x24xf32>
    %c0_11 = arith.constant 0 : index
    %c0_12 = arith.constant 0 : index
    %26 = vector.load %arg4[%c0_11, %c0_12] : memref<1x24xf32, #tpu.memory_space<vmem>>, vector<1x24xf32>
    %27 = vector.broadcast %26 : vector<1x24xf32> to vector<64x24xf32>
    %28 = arith.addf %25, %27 : vector<64x24xf32>
    %29 = vector.shape_cast %28 : vector<64x24xf32> to vector<8x8x24xf32>
    %cst_13 = arith.constant 0.000000e+00 : f32
    %30 = vector.broadcast %cst_13 : f32 to vector<8x8x4xf32>
    %31 = vector.extract_strided_slice %29 {offsets = [0, 0, 0], sizes = [8, 8, 8], strides = [1, 1, 1]} : vector<8x8x24xf32> to vector<8x8x8xf32>
    %c0_14 = arith.constant 0 : index
    %c0_15 = arith.constant 0 : index
    %c0_16 = arith.constant 0 : index
    %c0_17 = arith.constant 0 : index
    %c0_18 = arith.constant 0 : index
    %c0_19 = arith.constant 0 : index
    %32 = vector.load %arg5[%c0_14, %c0_15, %c0_16, %c0_17, %c0_18, %c0_19] : memref<1x2x8x2x8x8xf32, #tpu.memory_space<vmem>>, vector<1x1x8x1x8x8xf32>
    %33 = vector.shape_cast %32 : vector<1x1x8x1x8x8xf32> to vector<8x8x8xf32>
    %34 = vector.shape_cast %31 : vector<8x8x8xf32> to vector<1x1x8x1x8x8xf32>
    tpu.vector_store %arg5[%c0_14, %c0_15, %c0_16, %c0_17, %c0_18, %c0_19], %34 {strides = array<i32>} : memref<1x2x8x2x8x8xf32, #tpu.memory_space<vmem>>, vector<1x1x8x1x8x8xf32>,
    %35 = vector.extract_strided_slice %29 {offsets = [0, 0, 8], sizes = [8, 8, 4], strides = [1, 1, 1]} : vector<8x8x24xf32> to vector<8x8x4xf32>
    %c0_20 = arith.constant 0 : index
    %c0_21 = arith.constant 0 : index
    %c0_22 = arith.constant 0 : index
    %c1 = arith.constant 1 : index
    %c0_23 = arith.constant 0 : index
    %c0_24 = arith.constant 0 : index
    %36 = vector.load %arg5[%c0_20, %c0_21, %c0_22, %c1, %c0_23, %c0_24] : memref<1x2x8x2x8x8xf32, #tpu.memory_space<vmem>>, vector<1x1x8x1x8x4xf32>
    %37 = vector.shape_cast %36 : vector<1x1x8x1x8x4xf32> to vector<8x8x4xf32>
    %38 = vector.shape_cast %35 : vector<8x8x4xf32> to vector<1x1x8x1x8x4xf32>
    tpu.vector_store %arg5[%c0_20, %c0_21, %c0_22, %c1, %c0_23, %c0_24], %38 {strides = array<i32>} : memref<1x2x8x2x8x8xf32, #tpu.memory_space<vmem>>, vector<1x1x8x1x8x4xf32>,
    %c0_25 = arith.constant 0 : index
    %c0_26 = arith.constant 0 : index
    %c0_27 = arith.constant 0 : index
    %c1_28 = arith.constant 1 : index
    %c0_29 = arith.constant 0 : index
    %c4 = arith.constant 4 : index
    %39 = vector.load %arg5[%c0_25, %c0_26, %c0_27, %c1_28, %c0_29, %c4] : memref<1x2x8x2x8x8xf32, #tpu.memory_space<vmem>>, vector<1x1x8x1x8x4xf32>
    %40 = vector.shape_cast %39 : vector<1x1x8x1x8x4xf32> to vector<8x8x4xf32>
    %41 = vector.shape_cast %30 : vector<8x8x4xf32> to vector<1x1x8x1x8x4xf32>
    tpu.vector_store %arg5[%c0_25, %c0_26, %c0_27, %c1_28, %c0_29, %c4], %41 {strides = array<i32>} : memref<1x2x8x2x8x8xf32, #tpu.memory_space<vmem>>, vector<1x1x8x1x8x4xf32>,
    %42 = vector.extract_strided_slice %29 {offsets = [0, 0, 12], sizes = [8, 8, 8], strides = [1, 1, 1]} : vector<8x8x24xf32> to vector<8x8x8xf32>
    %c0_30 = arith.constant 0 : index
    %c1_31 = arith.constant 1 : index
    %c0_32 = arith.constant 0 : index
    %c0_33 = arith.constant 0 : index
    %c0_34 = arith.constant 0 : index
    %c0_35 = arith.constant 0 : index
    %43 = vector.load %arg5[%c0_30, %c1_31, %c0_32, %c0_33, %c0_34, %c0_35] : memref<1x2x8x2x8x8xf32, #tpu.memory_space<vmem>>, vector<1x1x8x1x8x8xf32>
    %44 = vector.shape_cast %43 : vector<1x1x8x1x8x8xf32> to vector<8x8x8xf32>
    %45 = vector.shape_cast %42 : vector<8x8x8xf32> to vector<1x1x8x1x8x8xf32>
    tpu.vector_store %arg5[%c0_30, %c1_31, %c0_32, %c0_33, %c0_34, %c0_35], %45 {strides = array<i32>} : memref<1x2x8x2x8x8xf32, #tpu.memory_space<vmem>>, vector<1x1x8x1x8x8xf32>,
    %c0_36 = arith.constant 0 : index
    %c1_37 = arith.constant 1 : index
    %c0_38 = arith.constant 0 : index
    %c1_39 = arith.constant 1 : index
    %c0_40 = arith.constant 0 : index
    %c0_41 = arith.constant 0 : index
    %46 = vector.load %arg5[%c0_36, %c1_37, %c0_38, %c1_39, %c0_40, %c0_41] : memref<1x2x8x2x8x8xf32, #tpu.memory_space<vmem>>, vector<1x1x8x1x8x4xf32>
    %47 = vector.shape_cast %46 : vector<1x1x8x1x8x4xf32> to vector<8x8x4xf32>
    %48 = vector.shape_cast %30 : vector<8x8x4xf32> to vector<1x1x8x1x8x4xf32>
    tpu.vector_store %arg5[%c0_36, %c1_37, %c0_38, %c1_39, %c0_40, %c0_41], %48 {strides = array<i32>} : memref<1x2x8x2x8x8xf32, #tpu.memory_space<vmem>>, vector<1x1x8x1x8x4xf32>,
    %49 = vector.extract_strided_slice %29 {offsets = [0, 0, 20], sizes = [8, 8, 4], strides = [1, 1, 1]} : vector<8x8x24xf32> to vector<8x8x4xf32>
    %c0_42 = arith.constant 0 : index
    %c1_43 = arith.constant 1 : index
    %c0_44 = arith.constant 0 : index
    %c1_45 = arith.constant 1 : index
    %c0_46 = arith.constant 0 : index
    %c4_47 = arith.constant 4 : index
    %50 = vector.load %arg5[%c0_42, %c1_43, %c0_44, %c1_45, %c0_46, %c4_47] : memref<1x2x8x2x8x8xf32, #tpu.memory_space<vmem>>, vector<1x1x8x1x8x4xf32>
    %51 = vector.shape_cast %50 : vector<1x1x8x1x8x4xf32> to vector<8x8x4xf32>
    %52 = vector.shape_cast %49 : vector<8x8x4xf32> to vector<1x1x8x1x8x4xf32>
    tpu.vector_store %arg5[%c0_42, %c1_43, %c0_44, %c1_45, %c0_46, %c4_47], %52 {strides = array<i32>} : memref<1x2x8x2x8x8xf32, #tpu.memory_space<vmem>>, vector<1x1x8x1x8x4xf32>,
    return
  }
  func.func @transform_0(%arg0: i32, %arg1: i32) -> (i32, i32, i32, i32) {
    %c0_i32 = arith.constant 0 : i32
    %c0_i32_0 = arith.constant 0 : i32
    %c0_i32_1 = arith.constant 0 : i32
    return %arg0, %arg1, %c0_i32, %c0_i32_0 : i32, i32, i32, i32
  }
  func.func @transform_1(%arg0: i32, %arg1: i32) -> (i32, i32) {
    %c0_i32 = arith.constant 0 : i32
    %c0_i32_0 = arith.constant 0 : i32
    %c0_i32_1 = arith.constant 0 : i32
    return %c0_i32, %c0_i32_0 : i32, i32
  }
  func.func @transform_2(%arg0: i32, %arg1: i32) -> (i32, i32) {
    %c0_i32 = arith.constant 0 : i32
    %c0_i32_0 = arith.constant 0 : i32
    %c0_i32_1 = arith.constant 0 : i32
    return %c0_i32, %c0_i32_0 : i32, i32
  }
  func.func @transform_3(%arg0: i32, %arg1: i32) -> (i32, i32, i32, i32, i32, i32) {
    %c0_i32 = arith.constant 0 : i32
    %c0_i32_0 = arith.constant 0 : i32
    %c0_i32_1 = arith.constant 0 : i32
    %c0_i32_2 = arith.constant 0 : i32
    %c0_i32_3 = arith.constant 0 : i32
    return %arg0, %c0_i32, %arg1, %c0_i32_0, %c0_i32_1, %c0_i32_2 : i32, i32, i32, i32, i32, i32
  }
}

</mosaic_0001>

<bundles_post_ra>
// kernel: patch_expanding_forward.1
= control target key start
LH: loop header
LB: loop body
LE: loop exit
PB: predicated region body
PF: predicated region fallthrough
CT: control target
= control target key end

     0   :  { %8 = vsyncpa [#allocation3], 0  ;;  %s1312_s0 = inlined_call_operand.hbm [shape: f32[8,8,8,8], index: 0, kind: input, shape index: {}]   ;;  %s1313_s1 = inlined_call_operand.vmem [shape: bf16[8,24], index: 1, kind: input, shape index: {}]   ;;  %s1314_s2 = inlined_call_operand.vmem [shape: f32[1,24], index: 2, kind: input, shape index: {}]   ;;  %s1315_s3 = inlined_call_operand.vmem [shape: f32[8,2,8,2,8,8], index: 3, kind: output, shape index: {}]  }
   0x1   :  { %10 = vsyncpa [#allocation3 + $0x1], 0  ;;  %s952_s12 = smov 0   ;;  %s954_s13 = smov 0  }
   0x2   :  { %s956_s14 = smov 0   ;;  %s958_s15 = smov 0  }
   0x3   :  { %s960_s16 = smov 0   ;;  %s962_s17 = smov 0  }
   0x4 LB: > { %s687_s18 = sadd.s32 4294967295, %s923_s17   ;;  %s28_s19 = sadd.s32 1, %s919_s16  ;;  %s923_s17 = sphi %s962_s17, %s16_s17   ;;  %s919_s16 = sphi %s960_s16, %s1323_s16   ;;  %s915_s15 = sphi %s958_s15, %s1322_s15   ;;  %s911_s14 = sphi %s956_s14, %s1321_s14   ;;  %s907_s13 = sphi %s954_s13, %s1320_s13   ;;  %s903_s12 = sphi %s952_s12, %s1319_s12  }
   0x5   : > { %p30_p0 = scmp.ge.s32.totalorder %s28_s19, 8  ;;  %s37_s20 = sadd.s32 1, %s911_s14 }
   0x6   : > { %p44_p1 = scmp.ne.s32.totalorder %s911_s14, %s907_s13  ;;  %p45_p2 = scmp.eq.s32.totalorder %s923_s17, 0 }
   0x7   : > { %s1325_s19 = smov (%p30_p0, %s28_s19), 0  ;;  %p50_p4 = scmp.ne.s32.totalorder %s907_s13, %s903_s12 }
   0x8   : > { %p988_p3 = por %p45_p2, %p44_p1  ;;  %s32_s22 = ssub.s32 %s919_s16, %s1325_s19 }
   0x9   : > { %p51_p5 = scmp.eq.s32.totalorder %s687_s18, 0  ;;  %p35_p6 = scmp.eq.s32.totalorder %s32_s22, 0 }
   0xa   : > { %p772_p8 = scmp.lt.s32.totalorder %s923_s17, 8  ;;  %s150_s25 = sand.u32 1, %s911_s14  }
   0xb   : > { %p995_p7 = por %p51_p5, %p50_p4  ;;  %s745_s26 = sshll.u32 %s919_s16, 10 }
   0xc   : > { %s1001_s24 = scalar_select %p35_p6, %s911_s14, %s37_s20  }
   0xd   : > { %s691_s27 = sshll.u32 %s150_s25, 6  ;;  %s1008_s30 = scalar_lea.hbm %s1312_s0, %s745_s26 }
   0xe   : > { %s154_s4 = scalar_lea.vmem [#allocation2], %s691_s27  ;;  %p1012_p9 = pnand %p772_p8, %p988_p3 }
   0xf   : > { %s163_s5 = sshll.u32 %s154_s4, 4  ;;  %s1018_s7 = scalar_lea.sflag [#allocation3], %s150_s25  ;;  %s1016_s5 = int_to_ptr.vmem [resolvable:$true] %s163_s5 }
  0x10   : > { %s843_s8 = scalar_lea.hbm %s1008_s30, 1024  ;;  %p845_p11 = pneg %p1012_p9 }
  0x11   : > { %p844_p10 = scmp.ne.s32.totalorder %s1008_s30, %s843_s8  ;;  %s848_s11 = scalar_lea.hbm %s1312_s0, 8192 }
  0x12   : > { %p849_p0 = scmp.lt.u32.totalorder %s1008_s30, %s1312_s0  ;;  %p850_p1 = scmp.lt.u32.totalorder %s848_s11, %s843_s8 }
  0x13   : > { %p846_p12 = pnand %p845_p11, %p844_p10  ;;  %p852_p3 = scmp.lt.u32.totalorder %s843_s8, %s1008_s30 }
  0x14   : > { %p851_p2 = por %p850_p1, %p849_p0 }
  0x15   : > { %p847_p13 = pneg %p846_p12 }
  0x16   : > { %p853_p4 = por %p852_p3, %p851_p2 }
  0x18   : > { %p854_p5 = pnand %p853_p4, %p847_p13 }
  0x1a   : > { %857 = shalt.err (!%p854_p5)
}
  0x1b   : > { %s858_s20 = scalar_lea.vmem %s1016_s5, 1024  ;;  %s925_s21 = smov [#allocation2]  }
  0x1c   : > { %p859_p6 = scmp.ne.s32.totalorder %s1016_s5, %s858_s20  ;;  %s863_s22 = sshll.u32 %s925_s21, 4  ;;  %s864_s22 = int_to_ptr.vmem [resolvable:$false] %s863_s22 }
  0x1d   : > { %s865_s25 = scalar_lea.vmem %s864_s22, 2048  ;;  %p866_p12 = scmp.lt.s32.totalorder %s1016_s5, %s864_s22 }
  0x1e   : > { %p861_p8 = pnand %p859_p6, %p845_p11  ;;  %p867_p0 = scmp.lt.s32.totalorder %s865_s25, %s858_s20 }
  0x20   : > { %p862_p10 = pneg %p861_p8  ;;  %p868_p1 = por %p867_p0, %p866_p12 }
  0x22   : > { %p869_p2 = pnand %p868_p1, %p862_p10 }
  0x24   : > { %872 = shalt.err (!%p869_p2)
}
  0x25   : > { %s926_s26 = smov 128   ;;  %s927_s27 = smov 8  }
  0x26   : > { %771 = dma.hbm_to_vmem [thread:$0]  (!%p1012_p9), %s1008_s30, 1024, %s1016_s5, %s1018_s7, %s926_s26, %s926_s26, %s927_s27  }
  0x27   : > { %p694_p11 = scmp.ge.s32.totalorder %s923_s17, 1  ;;  %p171_p13 = scmp.lt.s32.totalorder %s923_s17, 9 }
  0x29   : > { %p172_p3 = pnand %p694_p11, %p171_p13 }
  0x2a   : > { %s177_s28 = sand.u32 (!%p172_p3), 1, %s907_s13  }
  0x2b   : > { %175 = sbr.rel (%p172_p3) target bundleno = 621 (0x26d), region = 32  ;;  %s695_s29 = sshll.u32 (!%p172_p3), %s177_s28, 6 }
  0x2c   : > { %s178_s4 = scalar_lea.sflag (!%p172_p3), [#allocation3], %s177_s28  ;;  %s181_s8 = scalar_lea.vmem (!%p172_p3), [#allocation2], %s695_s29 }
  0x32   : > { %898 = dma.done.wait (%p995_p7), %s178_s4, 1024  }
  0x33   : > { %900 = vsyncadd (%p995_p7), %s178_s4, 4294966272  ;;  %vm230_vm0 = vcmask 64512   ;;  %v1053_v0 = vld [vmem:[%s181_s8 + $0x20] sm:$0xff]  ;;  %v1057_v2 = vld [vmem:[%s181_s8 + $0x28] sm:$0xff]  ;;  %vm384_vm1 = vcmask 1043456   ;;  %p211_p7 = scmp.lt.s32.totalorder %s915_s15, 7 }
  0x34   : > { %v1055_v1 = vld [vmem:[%s181_s8] sm:$0xff]  ;;  %v243_v3 = vsel %vm230_vm0, %v1053_v0, 0.0  ;;  %v1063_v5 = vld [vmem:[%s181_s8 + $0x8] sm:$0xff]  ;;  %v246_v6 = vsel %vm230_vm0, %v1057_v2, 0.0  ;;  %v1069_v8 = vld [vmem:[%s181_s8 + $0x18] sm:$0xff]  ;;  %v269_v20 = vmul.f32 %v1057_v2, %v1057_v2  ;;  %v268_v21 = vmul.f32 %v1053_v0, %v1053_v0  ;;  %s929_s11 = smov 120  }
  0x35   : > { %v231_v4 = vsel %vm230_vm0, %v1055_v1, 0.0  ;;  %244 = vadd.xlane.f32.xlu1 %v243_v3  ;;  %v234_v7 = vsel %vm230_vm0, %v1063_v5, 0.0  ;;  %v1071_v9 = vld [vmem:[%s181_s8 + $0x10] sm:$0xff]  ;;  %v240_v10 = vsel %vm230_vm0, %v1069_v8, 0.0  ;;  %v1077_v12 = vld [vmem:[%s181_s8 + $0x38] sm:$0xff]  ;;  %v265_v16 = vmul.f32 %v1063_v5, %v1063_v5  ;;  %s1327_s15 = smov (!%p211_p7, %s915_s15), 7 }
  0x36   : > { %232 = vadd.xlane.f32.xlu0 %v231_v4  ;;  %v237_v11 = vsel %vm230_vm0, %v1071_v9, 0.0  ;;  %v1079_v13 = vld [vmem:[%s181_s8 + $0x30] sm:$0xff]  ;;  %v252_v14 = vsel %vm230_vm0, %v1077_v12, 0.0  ;;  %v264_v17 = vmul.f32 %v1055_v1, %v1055_v1  ;;  %v287_v22 = vsel %vm230_vm0, %v269_v20, 0.0  ;;  %v364_v32 = vld [vmem:[%s1313_s1] sm:$0xf] }
  0x37   : > { %v249_v15 = vsel %vm230_vm0, %v1079_v13, 0.0  ;;  %v275_v18 = vsel %vm230_vm0, %v265_v16, 0.0  ;;  %v284_v23 = vsel %vm230_vm0, %v268_v21, 0.0  ;;  %v267_v24 = vmul.f32 %v1069_v8, %v1069_v8  ;;  %764 = vmatprep.subr.msk.bf16.mxu0 %vm384_vm1, %v364_v32  ;;  %765 = vmatprep.subr.msk.bf16.mxu1 %vm384_vm1, %v364_v32  ;;  %s746_s5 = sshll.u32 %s1327_s15, 8  ;;  %s930_s12 = smov 116  }
  0x38   : > { %v272_v19 = vsel %vm230_vm0, %v264_v17, 0.0  ;;  %v266_v25 = vmul.f32 %v1071_v9, %v1071_v9  ;;  %v271_v28 = vmul.f32 %v1077_v12, %v1077_v12  ;;  %v270_v29 = vmul.f32 %v1079_v13, %v1079_v13  ;;  %s1169_s9 = scalar_lea.vmem %s1315_s3, %s746_s5  ;;  %s931_s18 = smov 112  }
  0x39   : > { %247 = vadd.xlane.f32.xlu1 %v246_v6  ;;  %v281_v26 = vsel %vm230_vm0, %v267_v24, 0.0  ;;  %v386_v33 = vsel %vm384_vm1, %v364_v32, 0  ;;  %vm494_vm2 = vcmask 31744   ;;  %vm503_vm3 = vcmask 64544  }
  0x3a   : > { %235 = vadd.xlane.f32.xlu0 %v234_v7  ;;  %v278_v27 = vsel %vm230_vm0, %v266_v25, 0.0  ;;  %v293_v30 = vsel %vm230_vm0, %v271_v28, 0.0  ;;  %v290_v31 = vsel %vm230_vm0, %v270_v29, 0.0  ;;  %753 = vmatpush3.bf16.msra.mxu0 %v386_v33 }
  0x3b   : > { %763 = vmatpush3.bf16.msra.mxu1 %v386_v33 }
  0x3d   : > { %241 = vadd.xlane.f32.xlu1 %v240_v10 }
  0x3e   : > { %238 = vadd.xlane.f32.xlu0 %v237_v11 }
  0x41   : > { %253 = vadd.xlane.f32.xlu1 %v252_v14 }
  0x42   : > { %250 = vadd.xlane.f32.xlu0 %v249_v15 }
  0x45   : > { %276 = vadd.xlane.f32.xlu1 %v275_v18 }
  0x46   : > { %273 = vadd.xlane.f32.xlu0 %v272_v19 }
  0x49   : > { %288 = vadd.xlane.f32.xlu1 %v287_v22 }
  0x4a   : > { %285 = vadd.xlane.f32.xlu0 %v284_v23 }
  0x4d   : > { %282 = vadd.xlane.f32.xlu1 %v281_v26 }
  0x4e   : > { %279 = vadd.xlane.f32.xlu0 %v278_v27 }
  0x51   : > { %294 = vadd.xlane.f32.xlu1 %v293_v30 }
  0x52   : > { %291 = vadd.xlane.f32.xlu0 %v290_v31 }
  0xc2   : > { %v245_v34 = vpop.xlane.xlu1 %244 }
  0xc3   : > { %v233_v35 = vpop.xlane.xlu0 %232  ;;  %v1116_v44 = vmul.f32 0.125, %v245_v34 }
  0xc4   : > { %v1112_v42 = vmul.f32 0.125, %v233_v35 }
  0xc5   : > { %v308_v54 = vmul.f32 %v1116_v44, %v1116_v44 }
  0xc6   : > { %v248_v36 = vpop.xlane.xlu1 %247  ;;  %v304_v48 = vmul.f32 %v1112_v42, %v1112_v42 }
  0xc7   : > { %v236_v37 = vpop.xlane.xlu0 %235  ;;  %v1118_v45 = vmul.f32 0.125, %v248_v36 }
  0xc8   : > { %v1114_v43 = vmul.f32 0.125, %v236_v37 }
  0xc9   : > { %v309_v55 = vmul.f32 %v1118_v45, %v1118_v45 }
  0xca   : > { %v242_v38 = vpop.xlane.xlu1 %241  ;;  %v305_v49 = vmul.f32 %v1114_v43, %v1114_v43 }
  0xcb   : > { %v239_v39 = vpop.xlane.xlu0 %238  ;;  %v1128_v56 = vmul.f32 0.125, %v242_v38 }
  0xcc   : > { %v1130_v63 = vmul.f32 0.125, %v239_v39 }
  0xcd   : > { %v307_v10 = vmul.f32 %v1128_v56, %v1128_v56 }
  0xce   : > { %v254_v40 = vpop.xlane.xlu1 %253  ;;  %v306_v20 = vmul.f32 %v1130_v63, %v1130_v63 }
  0xcf   : > { %v251_v41 = vpop.xlane.xlu0 %250  ;;  %v1134_v11 = vmul.f32 0.125, %v254_v40  ;;  %v329_v40 = vsub.f32 %v1063_v5, %v1114_v43 }
  0xd0   : > { %v1136_v14 = vmul.f32 0.125, %v251_v41 }
  0xd1   : > { %v311_v25 = vmul.f32 %v1134_v11, %v1134_v11 }
  0xd2   : > { %v277_v46 = vpop.xlane.xlu1 %276  ;;  %v310_v26 = vmul.f32 %v1136_v14, %v1136_v14 }
  0xd3   : > { %v274_v47 = vpop.xlane.xlu0 %273  ;;  %v297_v50 = vmul.f32 0.125, %v277_v46  ;;  %v328_v46 = vsub.f32 %v1055_v1, %v1112_v42  ;;  %v331_v42 = vsub.f32 %v1069_v8, %v1128_v56 }
  0xd4   : > { %v296_v51 = vmul.f32 0.125, %v274_v47 }
  0xd5   : > { %v313_v52 = vsub.f32 %v297_v50, %v305_v49 }
  0xd6   : > { %v312_v53 = vsub.f32 %v296_v51, %v304_v48  ;;  %v289_v57 = vpop.xlane.xlu1 %288 }
  0xd7   : > { %v286_v58 = vpop.xlane.xlu0 %285  ;;  %v321_v59 = vmax.f32 %v313_v52, 0.0  ;;  %v301_v61 = vmul.f32 0.125, %v289_v57  ;;  %v333_v52 = vsub.f32 %v1057_v2, %v1118_v45 }
  0xd8   : > { %v320_v60 = vmax.f32 %v312_v53, 0.0  ;;  %v300_v62 = vmul.f32 0.125, %v286_v58  ;;  %v330_v58 = vsub.f32 %v1071_v9, %v1130_v63 }
  0xd9   : > { %v337_v3 = vadd.f32 1e-05, %v321_v59  ;;  %v317_v6 = vsub.f32 %v301_v61, %v309_v55  ;;  %v334_v61 = vsub.f32 %v1079_v13, %v1136_v14  ;;  %v698_v13 = vld [vmem:[%s1314_s2] ss:$0 sm:$0xff] }
  0xda   : > { %v336_v4 = vadd.f32 1e-05, %v320_v60  ;;  %v316_v7 = vsub.f32 %v300_v62, %v308_v54  ;;  %v283_v15 = vpop.xlane.xlu1 %282  ;;  %v332_v54 = vsub.f32 %v1053_v0, %v1116_v44  ;;  %v335_v44 = vsub.f32 %v1077_v12, %v1134_v11 }
  0xdb   : > { %v280_v16 = vpop.xlane.xlu0 %279  ;;  %827 = vrsqrt.f32 %v337_v3  ;;  %v325_v17 = vmax.f32 %v317_v6, 0.0  ;;  %v299_v19 = vmul.f32 0.125, %v283_v15  ;;  %v928_v12 = vmov 0.0  }
  0xdc   : > { %v324_v18 = vmax.f32 %v316_v7, 0.0  ;;  %829 = vrsqrt.f32 %v336_v4  ;;  %v298_v21 = vmul.f32 0.125, %v280_v16  ;;  %727 = vst.msk [vmem:[%s1169_s9 + $0x88] sm:$0xff] %vm494_vm2, %v928_v12  ;;  %728 = vst.msk [vmem:[%s1169_s9 + $0x98] sm:$0xff] %vm494_vm2, %v928_v12 }
  0xdd   : > { %v341_v22 = vadd.f32 1e-05, %v325_v17  ;;  %v315_v24 = vsub.f32 %v299_v19, %v307_v10  ;;  %729 = vst.msk [vmem:[%s1169_s9 + $0xa8] sm:$0xff] %vm494_vm2, %v928_v12  ;;  %730 = vst.msk [vmem:[%s1169_s9 + $0xb8] sm:$0xff] %vm494_vm2, %v928_v12 }
  0xde   : > { %v340_v23 = vadd.f32 1e-05, %v324_v18  ;;  %v314_v27 = vsub.f32 %v298_v21, %v306_v20  ;;  %v295_v28 = vpop.xlane.xlu1 %294  ;;  %731 = vst.msk [vmem:[%s1169_s9 + $0xc8] sm:$0xff] %vm494_vm2, %v928_v12  ;;  %732 = vst.msk [vmem:[%s1169_s9 + $0xd8] sm:$0xff] %vm494_vm2, %v928_v12 }
  0xdf   : > { %v292_v29 = vpop.xlane.xlu0 %291  ;;  %831 = vrsqrt.f32 %v341_v22  ;;  %v323_v30 = vmax.f32 %v315_v24, 0.0  ;;  %v303_v31 = vmul.f32 0.125, %v295_v28  ;;  %733 = vst.msk [vmem:[%s1169_s9 + $0xe8] sm:$0xff] %vm494_vm2, %v928_v12  ;;  %734 = vst.msk [vmem:[%s1169_s9 + $0xf8] sm:$0xff] %vm494_vm2, %v928_v12 }
  0xe0   : > { %v302_v32 = vmul.f32 0.125, %v292_v29  ;;  %833 = vrsqrt.f32 %v340_v23  ;;  %v322_v33 = vmax.f32 %v314_v27, 0.0 }
  0xe1   : > { %v339_v34 = vadd.f32 1e-05, %v323_v30  ;;  %v319_v35 = vsub.f32 %v303_v31, %v311_v25 }
  0xe2   : > { %v318_v36 = vsub.f32 %v302_v32, %v310_v26  ;;  %v338_v37 = vadd.f32 1e-05, %v322_v33 }
  0xe3   : > { %835 = vrsqrt.f32 %v339_v34  ;;  %v327_v38 = vmax.f32 %v319_v35, 0.0 }
  0xe4   : > { %v326_v39 = vmax.f32 %v318_v36, 0.0  ;;  %837 = vrsqrt.f32 %v338_v37 }
  0xe5   : > { %v828_v41 = vpop.eup %827  ;;  %v343_v47 = vadd.f32 1e-05, %v327_v38 }
  0xe6   : > { %v342_v48 = vadd.f32 1e-05, %v326_v39  ;;  %v830_v49 = vpop.eup %829  ;;  %v353_v50 = vmul.f32 %v828_v41, %v329_v40 }
  0xe7   : > { %839 = vrsqrt.f32 %v343_v47  ;;  %v352_v51 = vmul.f32 %v830_v49, %v328_v46 }
  0xe8   : > { %841 = vrsqrt.f32 %v342_v48 }
  0xe9   : > { %v832_v53 = vpop.eup %831  ;;  %v360_v5 = vpack.c.bf16 %v353_v50, %v352_v51 }
  0xea   : > { %v834_v43 = vpop.eup %833  ;;  %v357_v55 = vmul.f32 %v832_v53, %v333_v52 }
  0xeb   : > { %754 = vmatprep.mubr.msk.bf16.mxu0 %vm230_vm0, %v360_v5  ;;  %v356_v1 = vmul.f32 %v834_v43, %v332_v54 }
  0xed   : > { %v836_v57 = vpop.eup %835  ;;  %v362_v2 = vpack.c.bf16 %v357_v55, %v356_v1 }
  0xee   : > { %v838_v45 = vpop.eup %837  ;;  %v355_v59 = vmul.f32 %v836_v57, %v331_v42 }
  0xef   : > { %758 = vmatprep.mubr.msk.bf16.mxu1 %vm230_vm0, %v362_v2  ;;  %v354_v0 = vmul.f32 %v838_v45, %v330_v58 }
  0xf1   : > { %v840_v60 = vpop.eup %839  ;;  %v361_v8 = vpack.c.bf16 %v355_v59, %v354_v0 }
  0xf2   : > { %v842_v56 = vpop.eup %841  ;;  %v359_v62 = vmul.f32 %v840_v60, %v335_v44 }
  0xf3   : > { %755 = vmatmul.mubr.msk.bf16.vlgmr.msra.gmra.mrb[0].mxu0 %vm230_vm0, %v361_v8  ;;  %v358_v9 = vmul.f32 %v842_v56, %v334_v61 }
  0xf5   : > { %v363_v63 = vpack.c.bf16 %v359_v62, %v358_v9 }
  0xf7   : > { %759 = vmatmul.mubr.msk.bf16.vlgmr.msra.gmra.mrb[0].mxu1 %vm230_vm0, %v363_v63 }
 0x1c6   : > { %v756_v3 = vpop.f32.mrb[0].mxu0 }
 0x1c7   : > { %v431_v4 = vadd.f32 %v756_v3, %v698_v13  ;;  %v422_v6 = vpop.f32.mrb[1].mxu0 }
 0x1c8   : > { %v423_v7 = vadd.f32 %v698_v13, %v422_v6  ;;  %v757_v10 = vpop.f32.mrb[2].mxu0 }
 0x1c9   : > { %455 = vst.msk [vmem:[%s1169_s9 + $0x20] sm:$0xff] %vm230_vm0, %v431_v4  ;;  %v434_v11 = vadd.f32 %v757_v10, %v698_v13  ;;  %473 = vrot.lane.b32.xlu1 %v431_v4, %s929_s11  ;;  %v425_v14 = vpop.f32.mrb[3].mxu0 }
 0x1ca   : > { %453 = vst.msk [vmem:[%s1169_s9] sm:$0xff] %vm230_vm0, %v423_v7  ;;  %v426_v15 = vadd.f32 %v698_v13, %v425_v14  ;;  %v760_v16 = vpop.f32.mrb[0].mxu1 }
 0x1cb   : > { %456 = vst.msk [vmem:[%s1169_s9 + $0x30] sm:$0xff] %vm230_vm0, %v434_v11  ;;  %v447_v17 = vadd.f32 %v760_v16, %v698_v13  ;;  %v438_v18 = vpop.f32.mrb[1].mxu1 }
 0x1cc   : > { %454 = vst.msk [vmem:[%s1169_s9 + $0x10] sm:$0xff] %vm230_vm0, %v426_v15  ;;  %v439_v19 = vadd.f32 %v698_v13, %v438_v18  ;;  %v761_v20 = vpop.f32.mrb[2].mxu1 }
 0x1cd   : > { %459 = vst.msk [vmem:[%s1169_s9 + $0x60] sm:$0xff] %vm230_vm0, %v447_v17  ;;  %v450_v21 = vadd.f32 %v761_v20, %v698_v13  ;;  %475 = vrot.lane.b32.xlu1 %v434_v11, %s929_s11  ;;  %481 = vrot.lane.b32.xlu0 %v447_v17, %s929_s11  ;;  %v441_v22 = vpop.f32.mrb[3].mxu1 }
 0x1ce   : > { %457 = vst.msk [vmem:[%s1169_s9 + $0x40] sm:$0xff] %vm230_vm0, %v439_v19  ;;  %v442_v23 = vadd.f32 %v698_v13, %v441_v22 }
 0x1cf   : > { %460 = vst.msk [vmem:[%s1169_s9 + $0x70] sm:$0xff] %vm230_vm0, %v450_v21 }
 0x1d0   : > { %458 = vst.msk [vmem:[%s1169_s9 + $0x50] sm:$0xff] %vm230_vm0, %v442_v23 }
 0x1d1   : > { %516 = vrot.lane.b32.xlu0 %v431_v4, %s930_s12  ;;  %483 = vrot.lane.b32.xlu1 %v450_v21, %s929_s11 }
 0x1d5   : > { %524 = vrot.lane.b32.xlu0 %v447_v17, %s930_s12  ;;  %518 = vrot.lane.b32.xlu1 %v434_v11, %s930_s12 }
 0x1d9   : > { %558 = vrot.lane.b32.xlu0 %v431_v4, %s931_s18  ;;  %526 = vrot.lane.b32.xlu1 %v450_v21, %s930_s12 }
 0x1dd   : > { %469 = vrot.lane.b32.xlu0 %v423_v7, %s929_s11  ;;  %560 = vrot.lane.b32.xlu1 %v434_v11, %s931_s18 }
 0x1e1   : > { %471 = vrot.lane.b32.xlu1 %v426_v15, %s929_s11  ;;  %477 = vrot.lane.b32.xlu0 %v439_v19, %s929_s11 }
 0x1e5   : > { %479 = vrot.lane.b32.xlu1 %v442_v23, %s929_s11  ;;  %512 = vrot.lane.b32.xlu0 %v423_v7, %s930_s12 }
 0x1e9   : > { %514 = vrot.lane.b32.xlu1 %v426_v15, %s930_s12  ;;  %520 = vrot.lane.b32.xlu0 %v439_v19, %s930_s12 }
 0x1ed   : > { %522 = vrot.lane.b32.xlu1 %v442_v23, %s930_s12  ;;  %554 = vrot.lane.b32.xlu0 %v423_v7, %s931_s18 }
 0x1f1   : > { %556 = vrot.lane.b32.xlu1 %v426_v15, %s931_s18  ;;  %562 = vrot.lane.b32.xlu0 %v439_v19, %s931_s18 }
 0x1f5   : > { %564 = vrot.lane.b32.xlu1 %v442_v23, %s931_s18  ;;  %566 = vrot.lane.b32.xlu0 %v447_v17, %s931_s18 }
 0x1f9   : > { %568 = vrot.lane.b32.xlu1 %v450_v21, %s931_s18 }
 0x23b   : > { %v474_v24 = vpop.permute.xlu1 %473 }
 0x23c   : > { %705 = vst.msk [vmem:[%s1169_s9 + $0x28] sm:$0xff] %vm494_vm2, %v474_v24 }
 0x23d   : > { %713 = vst.msk [vmem:[%s1169_s9 + $0x28] sm:$0xff] %vm503_vm3, %v928_v12 }
 0x23f   : > { %v476_v25 = vpop.permute.xlu1 %475  ;;  %v482_v26 = vpop.permute.xlu0 %481 }
 0x240   : > { %706 = vst.msk [vmem:[%s1169_s9 + $0x38] sm:$0xff] %vm494_vm2, %v476_v25  ;;  %709 = vst.msk [vmem:[%s1169_s9 + $0x68] sm:$0xff] %vm494_vm2, %v482_v26 }
 0x241   : > { %714 = vst.msk [vmem:[%s1169_s9 + $0x38] sm:$0xff] %vm503_vm3, %v928_v12  ;;  %717 = vst.msk [vmem:[%s1169_s9 + $0x68] sm:$0xff] %vm503_vm3, %v928_v12 }
 0x243   : > { %v517_v27 = vpop.permute.xlu0 %516  ;;  %v484_v28 = vpop.permute.xlu1 %483 }
 0x244   : > { %721 = vst.msk [vmem:[%s1169_s9 + $0xa0] sm:$0xff] %vm230_vm0, %v517_v27 }
 0x245   : > { %710 = vst.msk [vmem:[%s1169_s9 + $0x78] sm:$0xff] %vm494_vm2, %v484_v28 }
 0x246   : > { %718 = vst.msk [vmem:[%s1169_s9 + $0x78] sm:$0xff] %vm503_vm3, %v928_v12 }
 0x247   : > { %v525_v29 = vpop.permute.xlu0 %524  ;;  %v519_v30 = vpop.permute.xlu1 %518 }
 0x248   : > { %725 = vst.msk [vmem:[%s1169_s9 + $0xe0] sm:$0xff] %vm230_vm0, %v525_v29  ;;  %722 = vst.msk [vmem:[%s1169_s9 + $0xb0] sm:$0xff] %vm230_vm0, %v519_v30 }
 0x24b   : > { %v559_v31 = vpop.permute.xlu0 %558  ;;  %v527_v32 = vpop.permute.xlu1 %526 }
 0x24c   : > { %737 = vst.msk [vmem:[%s1169_s9 + $0xa8] sm:$0xff] %vm503_vm3, %v559_v31 }
 0x24d   : > { %726 = vst.msk [vmem:[%s1169_s9 + $0xf0] sm:$0xff] %vm230_vm0, %v527_v32 }
 0x24f   : > { %v470_v33 = vpop.permute.xlu0 %469  ;;  %v561_v34 = vpop.permute.xlu1 %560 }
 0x250   : > { %703 = vst.msk [vmem:[%s1169_s9 + $0x8] sm:$0xff] %vm494_vm2, %v470_v33 }
 0x251   : > { %738 = vst.msk [vmem:[%s1169_s9 + $0xb8] sm:$0xff] %vm503_vm3, %v561_v34  ;;  %711 = vst.msk [vmem:[%s1169_s9 + $0x8] sm:$0xff] %vm503_vm3, %v928_v12 }
 0x253   : > { %v472_v35 = vpop.permute.xlu1 %471  ;;  %v478_v36 = vpop.permute.xlu0 %477 }
 0x254   : > { %704 = vst.msk [vmem:[%s1169_s9 + $0x18] sm:$0xff] %vm494_vm2, %v472_v35  ;;  %707 = vst.msk [vmem:[%s1169_s9 + $0x48] sm:$0xff] %vm494_vm2, %v478_v36 }
 0x255   : > { %712 = vst.msk [vmem:[%s1169_s9 + $0x18] sm:$0xff] %vm503_vm3, %v928_v12  ;;  %715 = vst.msk [vmem:[%s1169_s9 + $0x48] sm:$0xff] %vm503_vm3, %v928_v12 }
 0x257   : > { %v480_v37 = vpop.permute.xlu1 %479  ;;  %v513_v38 = vpop.permute.xlu0 %512 }
 0x258   : > { %708 = vst.msk [vmem:[%s1169_s9 + $0x58] sm:$0xff] %vm494_vm2, %v480_v37 }
 0x259   : > { %719 = vst.msk [vmem:[%s1169_s9 + $0x80] sm:$0xff] %vm230_vm0, %v513_v38 }
 0x25a   : > { %716 = vst.msk [vmem:[%s1169_s9 + $0x58] sm:$0xff] %vm503_vm3, %v928_v12 }
 0x25b   : > { %v515_v39 = vpop.permute.xlu1 %514  ;;  %v521_v40 = vpop.permute.xlu0 %520 }
 0x25c   : > { %720 = vst.msk [vmem:[%s1169_s9 + $0x90] sm:$0xff] %vm230_vm0, %v515_v39  ;;  %723 = vst.msk [vmem:[%s1169_s9 + $0xc0] sm:$0xff] %vm230_vm0, %v521_v40 }
 0x25f   : > { %v523_v41 = vpop.permute.xlu1 %522  ;;  %v555_v46 = vpop.permute.xlu0 %554 }
 0x260   : > { %724 = vst.msk [vmem:[%s1169_s9 + $0xd0] sm:$0xff] %vm230_vm0, %v523_v41 }
 0x261   : > { %735 = vst.msk [vmem:[%s1169_s9 + $0x88] sm:$0xff] %vm503_vm3, %v555_v46 }
 0x263   : > { %v557_v47 = vpop.permute.xlu1 %556  ;;  %v563_v48 = vpop.permute.xlu0 %562 }
 0x264   : > { %736 = vst.msk [vmem:[%s1169_s9 + $0x98] sm:$0xff] %vm503_vm3, %v557_v47  ;;  %739 = vst.msk [vmem:[%s1169_s9 + $0xc8] sm:$0xff] %vm503_vm3, %v563_v48 }
 0x267   : > { %v565_v49 = vpop.permute.xlu1 %564  ;;  %v567_v50 = vpop.permute.xlu0 %566 }
 0x268   : > { %740 = vst.msk [vmem:[%s1169_s9 + $0xd8] sm:$0xff] %vm503_vm3, %v565_v49  ;;  %741 = vst.msk [vmem:[%s1169_s9 + $0xe8] sm:$0xff] %vm503_vm3, %v567_v50 }
 0x26b   : > { %v569_v51 = vpop.permute.xlu1 %568 }
 0x26c   : > { %742 = vst.msk [vmem:[%s1169_s9 + $0xf8] sm:$0xff] %vm503_vm3, %v569_v51 }
 0x26d PF: > { %s16_s17 = sadd.s32 1, %s923_s17   ;;  %s1319_s12 = smov %s907_s13 }
 0x26e   : > { %p13_p9 = scmp.ge.s32.totalorder %s16_s17, 10   ;;  %s1320_s13 = smov %s911_s14 }
 0x26f   : > { %s1321_s14 = smov %s1001_s24  ;;  %s1322_s15 = smov %s919_s16 }
 0x270   : > { %s1323_s16 = smov %s1325_s19  ;;  %15 = sbr.rel (!%p13_p9) target bundleno = 4 (0x4), region = 75 }
 0x277   :  { %618 = vsyncpa [#allocation3], 1 }
 0x278   :  { %620 = vsyncpa [#allocation3 + $0x1], 1 }

</bundles_post_ra>
